<compile_context>
chip_gen: v7x
topology: tpu7x:2x2x1
jax: 0.10.0
libtpu: 0.0.40
codegen_flags: <defaults>
</compile_context>

<pallas_src>
import functools
import math

import jax
import jax.numpy as jnp
from jax.experimental import pallas as pl
from jax.experimental.pallas import tpu as pltpu


# ------------------------------ Pallas kernel ------------------------------- #

def fused_netvlad_fc_kernel(x_ref, clusters_ref, clusters2t_ref, bn_scale_ref,
                            bn_bias_ref, fc_w_ref, fc_b_ref, out_ref,
                            *, n_batch, n_frames):
    """Fused NetVLAD + Dropout(eval) + Linear for the whole (small) batch.

    x_ref:          (B*N, D)   all frames of all batch elements
    clusters_ref:   (D, K)
    clusters2t_ref: (K, D)     clusters2 transposed (matches in-kernel layout)
    bn_scale/bias:  (1, K)     folded eval-mode BatchNorm1d
    fc_w_ref:       (K, D, OUT) torch fc weight re-indexed: fc_w3[k,d,:] == fc_w[d*K+k,:]
    fc_b_ref:       (1, OUT)
    out_ref:        (B, OUT)   lane-dense final output
    """
    f32 = jnp.float32
    x_all = x_ref[...].astype(f32)                       # (B*N, D)
    c2t = clusters2t_ref[...].astype(f32)                # (K, D)
    K, D = c2t.shape
    out_dim = out_ref.shape[1]

    # --- soft assignment for every frame (single MXU call) ---
    assign = jnp.dot(x_all, clusters_ref[...].astype(f32),
                     preferred_element_type=f32)         # (B*N, K)
    assign = assign * bn_scale_ref[...] + bn_bias_ref[...]   # folded eval BatchNorm
    assign = assign - jnp.max(assign, axis=-1, keepdims=True)
    assign = jnp.exp(assign)
    # EUP reciprocal instead of a VALU divide.
    assign = assign * pl.reciprocal(
        jnp.sum(assign, axis=-1, keepdims=True), approx=True)

    bias = fc_b_ref[...].astype(f32)                     # (1, OUT), hoisted
    ones_col = jnp.ones((n_frames, 1), f32)              # hoisted constant

    # --- per-batch residual aggregation + merged L2 norms, (K, D) layout ---
    v2_list = []
    for b in range(n_batch):                             # B is tiny & static: unroll
        lo = b * n_frames
        a_b = assign[lo:lo + n_frames, :]                # (N, K)
        x_b = x_all[lo:lo + n_frames, :]                 # (N, D)

        vlad = jax.lax.dot_general(a_b, x_b, (((0,), (0,)), ((), ())),
                                   preferred_element_type=f32)      # (K, D)
        a_sum = jax.lax.dot_general(a_b, ones_col, (((0,), (0,)), ((), ())),
                                    preferred_element_type=f32)     # (K, 1)
        vlad = vlad - a_sum * c2t

        # fused intra-(per-cluster) + global L2 normalisation: one tile multiply.
        row_ss = jnp.sum(vlad * vlad, axis=-1, keepdims=True)        # (K, 1)
        inv_row = jax.lax.rsqrt(jnp.maximum(row_ss, 1e-24))          # == 1/max(||.||,1e-12)
        g_ss = jnp.sum(row_ss * (inv_row * inv_row), axis=0, keepdims=True)  # (1, 1)
        inv_g = jax.lax.rsqrt(jnp.maximum(g_ss, 1e-24))
        v2_list.append(vlad * (inv_row * inv_g))                     # (K, D)

    # Dropout(p=0.4) is the identity at inference.

    # --- FC without flattening: out = bias + sum_k v2[:, k, :] @ W_k ---
    # (the d*K + k flatten ordering is already folded into fc_w_ref in the wrapper)
    acc = jnp.zeros((n_batch, out_dim), f32)
    for k in range(K):
        lhs_k = jnp.concatenate([v[k:k + 1, :] for v in v2_list], axis=0)  # (B, D)
        acc = acc + jnp.dot(lhs_k, fc_w_ref[k], preferred_element_type=f32)

    out_ref[...] = (acc + bias).astype(out_ref.dtype)    # lane-dense (B, 512) store


# --------------------------------- wrapper ----------------------------------- #

def stream_pooling_netvlad(x, clusters, clusters2, bn_scale, bn_bias, fc_w, fc_b):
    B, N, D = x.shape
    K = clusters.shape[1]
    out_size = fc_w.shape[1]

    # Trace-time layout plumbing (outside the kernel, negligible):
    x2 = x.reshape(B * N, D)                     # all frames -> one assign matmul
    clusters2_t = clusters2.T                    # (K, D), matches in-kernel layout
    # torch flattens vlad (B, D, K) row-major -> feature index d*K + k. Re-index the
    # fc weight to the kernel's (cluster, feature) layout: fc_w3[k, d, :] == fc_w[d*K+k, :]
    fc_w3 = fc_w.reshape(D, K, out_size).transpose(1, 0, 2)   # (K, D, OUT)

    vmem_spec = pl.BlockSpec(memory_space=pltpu.MemorySpace.VMEM)
    return pl.pallas_call(
        functools.partial(fused_netvlad_fc_kernel, n_batch=B, n_frames=N),
        out_shape=jax.ShapeDtypeStruct((B, out_size), jnp.float32),
        in_specs=[vmem_spec] * 7,
        out_specs=vmem_spec,
    )(x2, clusters, clusters2_t, bn_scale, bn_bias, fc_w3, fc_b)


# ---------------------------- pure-JAX reference ------------------------------ #

def reference(x, clusters, clusters2, bn_scale, bn_bias, fc_w, fc_b):
    B, N, D = x.shape
    K = clusters.shape[1]
    assign = x.reshape(-1, D) @ clusters
    assign = assign * bn_scale + bn_bias
    assign = jax.nn.softmax(assign, axis=1).reshape(B, N, K)
    a_sum = assign.sum(axis=1, keepdims=True)            # (B, 1, K)
    a = a_sum * clusters2[None]                          # (B, D, K)
    vlad = jnp.einsum('bnk,bnd->bdk', assign, x) - a     # (B, D, K)
    vlad = vlad / jnp.maximum(
        jnp.linalg.norm(vlad, axis=1, keepdims=True), 1e-12)
    vlad = vlad.reshape(B, D * K)
    vlad = vlad / jnp.maximum(
        jnp.linalg.norm(vlad, axis=1, keepdims=True), 1e-12)
    return vlad @ fc_w + fc_b


# ------------------------------------ main ------------------------------------ #

if __name__ == "__main__":
    # Small shapes consistent with StreamPooling(pool='NetVLAD'):
    B, N, D, K = 2, 8, 32, 8           # batch, frames_per_window, input_size, vocab_size
    OUT = 512                          # StreamPooling.OUTPUT_SIZE

    key = jax.random.PRNGKey(0)
    kx, kc1, kc2, kw, kb = jax.random.split(key, 5)

    x = jax.random.normal(kx, (B, N, D), dtype=jnp.float32)

    # NetVLAD parameters (deterministic init mirroring the torch module's shapes)
    clusters = (1.0 / math.sqrt(D)) * jax.random.normal(kc1, (D, K), dtype=jnp.float32)
    clusters2 = (1.0 / math.sqrt(D)) * jax.random.normal(kc2, (D, K), dtype=jnp.float32)

    # BatchNorm1d(K) in eval mode with default-initialized params/stats:
    bn_eps = 1e-5
    bn_scale = jnp.full((1, K), 1.0 / math.sqrt(1.0 + bn_eps), dtype=jnp.float32)
    bn_bias = jnp.zeros((1, K), dtype=jnp.float32)

    # fc = nn.Linear(D*K, 512); weight passed pre-transposed as (D*K, 512)
    bound = 1.0 / math.sqrt(D * K)
    fc_w = jax.random.uniform(kw, (D * K, OUT), dtype=jnp.float32,
                              minval=-bound, maxval=bound)
    fc_b = jax.random.uniform(kb, (1, OUT), dtype=jnp.float32,
                              minval=-bound, maxval=bound)

    fwd = jax.jit(stream_pooling_netvlad)
    out = fwd(x, clusters, clusters2, bn_scale, bn_bias, fc_w, fc_b)
    out = jax.block_until_ready(out)

    ref = reference(x, clusters, clusters2, bn_scale, bn_bias, fc_w, fc_b)
    assert out.shape == (B, OUT), out.shape
    # 5e-4 tolerance: the approximate EUP reciprocal in the softmax introduces
    # sub-1e-4-level differences vs. the exact-division reference.
    assert jnp.allclose(out, ref, rtol=5e-4, atol=5e-4), "mismatch vs pure-JAX reference"

    print("KERNEL_OK")
</pallas_src>

<mosaic_0001>
module attributes {stable_mosaic.version = 11 : i64} {
  func.func @fused_netvlad_fc_kernel(%arg0: memref<16x32xf32, #tpu.memory_space<vmem>>, %arg1: memref<32x8xf32, #tpu.memory_space<vmem>>, %arg2: memref<8x32xf32, #tpu.memory_space<vmem>>, %arg3: memref<1x8xf32, #tpu.memory_space<vmem>>, %arg4: memref<1x8xf32, #tpu.memory_space<vmem>>, %arg5: memref<8x32x512xf32, #tpu.memory_space<vmem>>, %arg6: memref<1x512xf32, #tpu.memory_space<vmem>>, %arg7: memref<2x512xf32, #tpu.memory_space<vmem>>) attributes {dimension_semantics = [], scalar_prefetch = 0 : i64, scratch_operands = 0 : i64, tpu.core_type = #tpu.core_type<tc>} {
    %c0 = arith.constant 0 : index
    %c0_0 = arith.constant 0 : index
    %0 = vector.load %arg0[%c0, %c0_0] : memref<16x32xf32, #tpu.memory_space<vmem>>, vector<16x32xf32>
    %c0_1 = arith.constant 0 : index
    %c0_2 = arith.constant 0 : index
    %1 = vector.load %arg2[%c0_1, %c0_2] : memref<8x32xf32, #tpu.memory_space<vmem>>, vector<8x32xf32>
    %c0_3 = arith.constant 0 : index
    %c0_4 = arith.constant 0 : index
    %2 = vector.load %arg1[%c0_3, %c0_4] : memref<32x8xf32, #tpu.memory_space<vmem>>, vector<32x8xf32>
    %cst = arith.constant dense<0.000000e+00> : vector<16x8xf32>
    %3 = tpu.matmul %0, %2, %cst {dimension_numbers = #tpu.dot_dimension_numbers<[1], [0], [0], [1], [0, 0, 1, 1], [], []>} : vector<16x32xf32>, vector<32x8xf32>, vector<16x8xf32> -> vector<16x8xf32>
    %c0_5 = arith.constant 0 : index
    %c0_6 = arith.constant 0 : index
    %4 = vector.load %arg3[%c0_5, %c0_6] : memref<1x8xf32, #tpu.memory_space<vmem>>, vector<1x8xf32>
    %5 = vector.broadcast %4 : vector<1x8xf32> to vector<16x8xf32>
    %6 = arith.mulf %3, %5 : vector<16x8xf32>
    %c0_7 = arith.constant 0 : index
    %c0_8 = arith.constant 0 : index
    %7 = vector.load %arg4[%c0_7, %c0_8] : memref<1x8xf32, #tpu.memory_space<vmem>>, vector<1x8xf32>
    %8 = vector.broadcast %7 : vector<1x8xf32> to vector<16x8xf32>
    %9 = arith.addf %6, %8 : vector<16x8xf32>
    %cst_9 = arith.constant dense<0xFF800000> : vector<16xf32>
    %10 = vector.multi_reduction <maximumf>, %9, %cst_9 [1] : vector<16x8xf32> to vector<16xf32>
    %11 = vector.shape_cast %10 : vector<16xf32> to vector<16x1xf32>
    %12 = vector.broadcast %11 : vector<16x1xf32> to vector<16x8xf32>
    %13 = arith.subf %9, %12 : vector<16x8xf32>
    %14 = math.exp %13 : vector<16x8xf32>
    %cst_10 = arith.constant dense<0.000000e+00> : vector<16xf32>
    %15 = vector.multi_reduction <add>, %14, %cst_10 [1] : vector<16x8xf32> to vector<16xf32>
    %16 = vector.shape_cast %15 : vector<16xf32> to vector<16x1xf32>
    %17 = tpu.reciprocal %16 {approx = true} : vector<16x1xf32> -> vector<16x1xf32>
    %18 = vector.broadcast %17 : vector<16x1xf32> to vector<16x8xf32>
    %19 = arith.mulf %14, %18 : vector<16x8xf32>
    %c0_11 = arith.constant 0 : index
    %c0_12 = arith.constant 0 : index
    %20 = vector.load %arg6[%c0_11, %c0_12] : memref<1x512xf32, #tpu.memory_space<vmem>>, vector<1x512xf32>
    %cst_13 = arith.constant 1.000000e+00 : f32
    %21 = vector.broadcast %cst_13 : f32 to vector<8x1xf32>
    %22 = vector.extract_strided_slice %19 {offsets = [0, 0], sizes = [8, 8], strides = [1, 1]} : vector<16x8xf32> to vector<8x8xf32>
    %23 = vector.extract_strided_slice %0 {offsets = [0, 0], sizes = [8, 32], strides = [1, 1]} : vector<16x32xf32> to vector<8x32xf32>
    %cst_14 = arith.constant dense<0.000000e+00> : vector<8x32xf32>
    %24 = tpu.matmul %22, %23, %cst_14 {dimension_numbers = #tpu.dot_dimension_numbers<[0], [0], [1], [1], [0, 1, 1, 1], [], []>} : vector<8x8xf32>, vector<8x32xf32>, vector<8x32xf32> -> vector<8x32xf32>
    %cst_15 = arith.constant dense<0.000000e+00> : vector<8x1xf32>
    %25 = tpu.matmul %22, %21, %cst_15 {dimension_numbers = #tpu.dot_dimension_numbers<[0], [0], [1], [1], [0, 1, 1, 1], [], []>} : vector<8x8xf32>, vector<8x1xf32>, vector<8x1xf32> -> vector<8x1xf32>
    %26 = vector.broadcast %25 : vector<8x1xf32> to vector<8x32xf32>
    %27 = arith.mulf %26, %1 : vector<8x32xf32>
    %28 = arith.subf %24, %27 : vector<8x32xf32>
    %29 = arith.mulf %28, %28 : vector<8x32xf32>
    %cst_16 = arith.constant dense<0.000000e+00> : vector<8xf32>
    %30 = vector.multi_reduction <add>, %29, %cst_16 [1] : vector<8x32xf32> to vector<8xf32>
    %31 = vector.shape_cast %30 : vector<8xf32> to vector<8x1xf32>
    %cst_17 = arith.constant 1.000000e-24 : f32
    %32 = vector.broadcast %cst_17 : f32 to vector<8x1xf32>
    %33 = arith.maximumf %31, %32 : vector<8x1xf32>
    %34 = math.rsqrt %33 : vector<8x1xf32>
    %35 = arith.mulf %34, %34 : vector<8x1xf32>
    %36 = arith.mulf %31, %35 : vector<8x1xf32>
    %cst_18 = arith.constant dense<0.000000e+00> : vector<1xf32>
    %37 = vector.multi_reduction <add>, %36, %cst_18 [0] : vector<8x1xf32> to vector<1xf32>
    %38 = vector.shape_cast %37 : vector<1xf32> to vector<1x1xf32>
    %cst_19 = arith.constant 1.000000e-24 : f32
    %39 = vector.broadcast %cst_19 : f32 to vector<1x1xf32>
    %40 = arith.maximumf %38, %39 : vector<1x1xf32>
    %41 = math.rsqrt %40 : vector<1x1xf32>
    %42 = vector.broadcast %41 : vector<1x1xf32> to vector<8x1xf32>
    %43 = arith.mulf %34, %42 : vector<8x1xf32>
    %44 = vector.broadcast %43 : vector<8x1xf32> to vector<8x32xf32>
    %45 = arith.mulf %28, %44 : vector<8x32xf32>
    %46 = vector.extract_strided_slice %19 {offsets = [8, 0], sizes = [8, 8], strides = [1, 1]} : vector<16x8xf32> to vector<8x8xf32>
    %47 = vector.extract_strided_slice %0 {offsets = [8, 0], sizes = [8, 32], strides = [1, 1]} : vector<16x32xf32> to vector<8x32xf32>
    %cst_20 = arith.constant dense<0.000000e+00> : vector<8x32xf32>
    %48 = tpu.matmul %46, %47, %cst_20 {dimension_numbers = #tpu.dot_dimension_numbers<[0], [0], [1], [1], [0, 1, 1, 1], [], []>} : vector<8x8xf32>, vector<8x32xf32>, vector<8x32xf32> -> vector<8x32xf32>
    %cst_21 = arith.constant dense<0.000000e+00> : vector<8x1xf32>
    %49 = tpu.matmul %46, %21, %cst_21 {dimension_numbers = #tpu.dot_dimension_numbers<[0], [0], [1], [1], [0, 1, 1, 1], [], []>} : vector<8x8xf32>, vector<8x1xf32>, vector<8x1xf32> -> vector<8x1xf32>
    %50 = vector.broadcast %49 : vector<8x1xf32> to vector<8x32xf32>
    %51 = arith.mulf %50, %1 : vector<8x32xf32>
    %52 = arith.subf %48, %51 : vector<8x32xf32>
    %53 = arith.mulf %52, %52 : vector<8x32xf32>
    %cst_22 = arith.constant dense<0.000000e+00> : vector<8xf32>
    %54 = vector.multi_reduction <add>, %53, %cst_22 [1] : vector<8x32xf32> to vector<8xf32>
    %55 = vector.shape_cast %54 : vector<8xf32> to vector<8x1xf32>
    %cst_23 = arith.constant 1.000000e-24 : f32
    %56 = vector.broadcast %cst_23 : f32 to vector<8x1xf32>
    %57 = arith.maximumf %55, %56 : vector<8x1xf32>
    %58 = math.rsqrt %57 : vector<8x1xf32>
    %59 = arith.mulf %58, %58 : vector<8x1xf32>
    %60 = arith.mulf %55, %59 : vector<8x1xf32>
    %cst_24 = arith.constant dense<0.000000e+00> : vector<1xf32>
    %61 = vector.multi_reduction <add>, %60, %cst_24 [0] : vector<8x1xf32> to vector<1xf32>
    %62 = vector.shape_cast %61 : vector<1xf32> to vector<1x1xf32>
    %cst_25 = arith.constant 1.000000e-24 : f32
    %63 = vector.broadcast %cst_25 : f32 to vector<1x1xf32>
    %64 = arith.maximumf %62, %63 : vector<1x1xf32>
    %65 = math.rsqrt %64 : vector<1x1xf32>
    %66 = vector.broadcast %65 : vector<1x1xf32> to vector<8x1xf32>
    %67 = arith.mulf %58, %66 : vector<8x1xf32>
    %68 = vector.broadcast %67 : vector<8x1xf32> to vector<8x32xf32>
    %69 = arith.mulf %52, %68 : vector<8x32xf32>
    %cst_26 = arith.constant 0.000000e+00 : f32
    %70 = vector.broadcast %cst_26 : f32 to vector<2x512xf32>
    %71 = vector.extract_strided_slice %45 {offsets = [0, 0], sizes = [1, 32], strides = [1, 1]} : vector<8x32xf32> to vector<1x32xf32>
    %72 = vector.extract_strided_slice %69 {offsets = [0, 0], sizes = [1, 32], strides = [1, 1]} : vector<8x32xf32> to vector<1x32xf32>
    %73 = tpu.concatenate %71, %72 in 0 : vector<1x32xf32>, vector<1x32xf32> -> vector<2x32xf32>
    %c0_27 = arith.constant 0 : index
    %c0_28 = arith.constant 0 : index
    %c0_29 = arith.constant 0 : index
    %74 = vector.load %arg5[%c0_27, %c0_28, %c0_29] : memref<8x32x512xf32, #tpu.memory_space<vmem>>, vector<1x32x512xf32>
    %75 = vector.shape_cast %74 : vector<1x32x512xf32> to vector<32x512xf32>
    %cst_30 = arith.constant dense<0.000000e+00> : vector<2x512xf32>
    %76 = tpu.matmul %73, %75, %cst_30 {dimension_numbers = #tpu.dot_dimension_numbers<[1], [0], [0], [1], [0, 0, 1, 1], [], []>} : vector<2x32xf32>, vector<32x512xf32>, vector<2x512xf32> -> vector<2x512xf32>
    %77 = arith.addf %70, %76 : vector<2x512xf32>
    %78 = vector.extract_strided_slice %45 {offsets = [1, 0], sizes = [1, 32], strides = [1, 1]} : vector<8x32xf32> to vector<1x32xf32>
    %79 = vector.extract_strided_slice %69 {offsets = [1, 0], sizes = [1, 32], strides = [1, 1]} : vector<8x32xf32> to vector<1x32xf32>
    %80 = tpu.concatenate %78, %79 in 0 : vector<1x32xf32>, vector<1x32xf32> -> vector<2x32xf32>
    %c1 = arith.constant 1 : index
    %c0_31 = arith.constant 0 : index
    %c0_32 = arith.constant 0 : index
    %81 = vector.load %arg5[%c1, %c0_31, %c0_32] : memref<8x32x512xf32, #tpu.memory_space<vmem>>, vector<1x32x512xf32>
    %82 = vector.shape_cast %81 : vector<1x32x512xf32> to vector<32x512xf32>
    %cst_33 = arith.constant dense<0.000000e+00> : vector<2x512xf32>
    %83 = tpu.matmul %80, %82, %cst_33 {dimension_numbers = #tpu.dot_dimension_numbers<[1], [0], [0], [1], [0, 0, 1, 1], [], []>} : vector<2x32xf32>, vector<32x512xf32>, vector<2x512xf32> -> vector<2x512xf32>
    %84 = arith.addf %77, %83 : vector<2x512xf32>
    %85 = vector.extract_strided_slice %45 {offsets = [2, 0], sizes = [1, 32], strides = [1, 1]} : vector<8x32xf32> to vector<1x32xf32>
    %86 = vector.extract_strided_slice %69 {offsets = [2, 0], sizes = [1, 32], strides = [1, 1]} : vector<8x32xf32> to vector<1x32xf32>
    %87 = tpu.concatenate %85, %86 in 0 : vector<1x32xf32>, vector<1x32xf32> -> vector<2x32xf32>
    %c2 = arith.constant 2 : index
    %c0_34 = arith.constant 0 : index
    %c0_35 = arith.constant 0 : index
    %88 = vector.load %arg5[%c2, %c0_34, %c0_35] : memref<8x32x512xf32, #tpu.memory_space<vmem>>, vector<1x32x512xf32>
    %89 = vector.shape_cast %88 : vector<1x32x512xf32> to vector<32x512xf32>
    %cst_36 = arith.constant dense<0.000000e+00> : vector<2x512xf32>
    %90 = tpu.matmul %87, %89, %cst_36 {dimension_numbers = #tpu.dot_dimension_numbers<[1], [0], [0], [1], [0, 0, 1, 1], [], []>} : vector<2x32xf32>, vector<32x512xf32>, vector<2x512xf32> -> vector<2x512xf32>
    %91 = arith.addf %84, %90 : vector<2x512xf32>
    %92 = vector.extract_strided_slice %45 {offsets = [3, 0], sizes = [1, 32], strides = [1, 1]} : vector<8x32xf32> to vector<1x32xf32>
    %93 = vector.extract_strided_slice %69 {offsets = [3, 0], sizes = [1, 32], strides = [1, 1]} : vector<8x32xf32> to vector<1x32xf32>
    %94 = tpu.concatenate %92, %93 in 0 : vector<1x32xf32>, vector<1x32xf32> -> vector<2x32xf32>
    %c3 = arith.constant 3 : index
    %c0_37 = arith.constant 0 : index
    %c0_38 = arith.constant 0 : index
    %95 = vector.load %arg5[%c3, %c0_37, %c0_38] : memref<8x32x512xf32, #tpu.memory_space<vmem>>, vector<1x32x512xf32>
    %96 = vector.shape_cast %95 : vector<1x32x512xf32> to vector<32x512xf32>
    %cst_39 = arith.constant dense<0.000000e+00> : vector<2x512xf32>
    %97 = tpu.matmul %94, %96, %cst_39 {dimension_numbers = #tpu.dot_dimension_numbers<[1], [0], [0], [1], [0, 0, 1, 1], [], []>} : vector<2x32xf32>, vector<32x512xf32>, vector<2x512xf32> -> vector<2x512xf32>
    %98 = arith.addf %91, %97 : vector<2x512xf32>
    %99 = vector.extract_strided_slice %45 {offsets = [4, 0], sizes = [1, 32], strides = [1, 1]} : vector<8x32xf32> to vector<1x32xf32>
    %100 = vector.extract_strided_slice %69 {offsets = [4, 0], sizes = [1, 32], strides = [1, 1]} : vector<8x32xf32> to vector<1x32xf32>
    %101 = tpu.concatenate %99, %100 in 0 : vector<1x32xf32>, vector<1x32xf32> -> vector<2x32xf32>
    %c4 = arith.constant 4 : index
    %c0_40 = arith.constant 0 : index
    %c0_41 = arith.constant 0 : index
    %102 = vector.load %arg5[%c4, %c0_40, %c0_41] : memref<8x32x512xf32, #tpu.memory_space<vmem>>, vector<1x32x512xf32>
    %103 = vector.shape_cast %102 : vector<1x32x512xf32> to vector<32x512xf32>
    %cst_42 = arith.constant dense<0.000000e+00> : vector<2x512xf32>
    %104 = tpu.matmul %101, %103, %cst_42 {dimension_numbers = #tpu.dot_dimension_numbers<[1], [0], [0], [1], [0, 0, 1, 1], [], []>} : vector<2x32xf32>, vector<32x512xf32>, vector<2x512xf32> -> vector<2x512xf32>
    %105 = arith.addf %98, %104 : vector<2x512xf32>
    %106 = vector.extract_strided_slice %45 {offsets = [5, 0], sizes = [1, 32], strides = [1, 1]} : vector<8x32xf32> to vector<1x32xf32>
    %107 = vector.extract_strided_slice %69 {offsets = [5, 0], sizes = [1, 32], strides = [1, 1]} : vector<8x32xf32> to vector<1x32xf32>
    %108 = tpu.concatenate %106, %107 in 0 : vector<1x32xf32>, vector<1x32xf32> -> vector<2x32xf32>
    %c5 = arith.constant 5 : index
    %c0_43 = arith.constant 0 : index
    %c0_44 = arith.constant 0 : index
    %109 = vector.load %arg5[%c5, %c0_43, %c0_44] : memref<8x32x512xf32, #tpu.memory_space<vmem>>, vector<1x32x512xf32>
    %110 = vector.shape_cast %109 : vector<1x32x512xf32> to vector<32x512xf32>
    %cst_45 = arith.constant dense<0.000000e+00> : vector<2x512xf32>
    %111 = tpu.matmul %108, %110, %cst_45 {dimension_numbers = #tpu.dot_dimension_numbers<[1], [0], [0], [1], [0, 0, 1, 1], [], []>} : vector<2x32xf32>, vector<32x512xf32>, vector<2x512xf32> -> vector<2x512xf32>
    %112 = arith.addf %105, %111 : vector<2x512xf32>
    %113 = vector.extract_strided_slice %45 {offsets = [6, 0], sizes = [1, 32], strides = [1, 1]} : vector<8x32xf32> to vector<1x32xf32>
    %114 = vector.extract_strided_slice %69 {offsets = [6, 0], sizes = [1, 32], strides = [1, 1]} : vector<8x32xf32> to vector<1x32xf32>
    %115 = tpu.concatenate %113, %114 in 0 : vector<1x32xf32>, vector<1x32xf32> -> vector<2x32xf32>
    %c6 = arith.constant 6 : index
    %c0_46 = arith.constant 0 : index
    %c0_47 = arith.constant 0 : index
    %116 = vector.load %arg5[%c6, %c0_46, %c0_47] : memref<8x32x512xf32, #tpu.memory_space<vmem>>, vector<1x32x512xf32>
    %117 = vector.shape_cast %116 : vector<1x32x512xf32> to vector<32x512xf32>
    %cst_48 = arith.constant dense<0.000000e+00> : vector<2x512xf32>
    %118 = tpu.matmul %115, %117, %cst_48 {dimension_numbers = #tpu.dot_dimension_numbers<[1], [0], [0], [1], [0, 0, 1, 1], [], []>} : vector<2x32xf32>, vector<32x512xf32>, vector<2x512xf32> -> vector<2x512xf32>
    %119 = arith.addf %112, %118 : vector<2x512xf32>
    %120 = vector.extract_strided_slice %45 {offsets = [7, 0], sizes = [1, 32], strides = [1, 1]} : vector<8x32xf32> to vector<1x32xf32>
    %121 = vector.extract_strided_slice %69 {offsets = [7, 0], sizes = [1, 32], strides = [1, 1]} : vector<8x32xf32> to vector<1x32xf32>
    %122 = tpu.concatenate %120, %121 in 0 : vector<1x32xf32>, vector<1x32xf32> -> vector<2x32xf32>
    %c7 = arith.constant 7 : index
    %c0_49 = arith.constant 0 : index
    %c0_50 = arith.constant 0 : index
    %123 = vector.load %arg5[%c7, %c0_49, %c0_50] : memref<8x32x512xf32, #tpu.memory_space<vmem>>, vector<1x32x512xf32>
    %124 = vector.shape_cast %123 : vector<1x32x512xf32> to vector<32x512xf32>
    %cst_51 = arith.constant dense<0.000000e+00> : vector<2x512xf32>
    %125 = tpu.matmul %122, %124, %cst_51 {dimension_numbers = #tpu.dot_dimension_numbers<[1], [0], [0], [1], [0, 0, 1, 1], [], []>} : vector<2x32xf32>, vector<32x512xf32>, vector<2x512xf32> -> vector<2x512xf32>
    %126 = arith.addf %119, %125 : vector<2x512xf32>
    %127 = vector.broadcast %20 : vector<1x512xf32> to vector<2x512xf32>
    %128 = arith.addf %126, %127 : vector<2x512xf32>
    %c0_52 = arith.constant 0 : index
    %c0_53 = arith.constant 0 : index
    %129 = vector.load %arg7[%c0_52, %c0_53] : memref<2x512xf32, #tpu.memory_space<vmem>>, vector<2x512xf32>
    tpu.vector_store %arg7[%c0_52, %c0_53], %128 {strides = array<i32>} : memref<2x512xf32, #tpu.memory_space<vmem>>, vector<2x512xf32>,
    return
  }
}

</mosaic_0001>

<bundles_post_ra>
// kernel: stream_pooling_netvlad.1
= control target key start
LH: loop header
LB: loop body
LE: loop exit
PB: predicated region body
PF: predicated region fallthrough
CT: control target
= control target key end

     0   :  { %vm34_vm0 = vcmask 261120   ;;  %s2937_s0 = inlined_call_operand.vmem [shape: f32[16,32], index: 0, kind: input, shape index: {}]   ;;  %s2938_s1 = inlined_call_operand.vmem [shape: f32[32,8], index: 1, kind: input, shape index: {}]   ;;  %s2939_s2 = inlined_call_operand.vmem [shape: f32[8,32], index: 2, kind: input, shape index: {}]   ;;  %s2940_s3 = inlined_call_operand.vmem [shape: f32[1,8], index: 3, kind: input, shape index: {}]   ;;  %s2941_s4 = inlined_call_operand.vmem [shape: f32[1,8], index: 4, kind: input, shape index: {}]   ;;  %s2942_s5 = inlined_call_operand.vmem [shape: f32[8,32,512], index: 5, kind: input, shape index: {}]   ;;  %s2943_s6 = inlined_call_operand.vmem [shape: f32[1,512], index: 6, kind: input, shape index: {}]   ;;  %s2944_s7 = inlined_call_operand.hbm [shape: f32[2,512], index: 7, kind: output, shape index: {}]  }
   0x1   :  { %v30_v0 = vld [vmem:[%s2938_s1] sm:$0xff]  ;;  %v31_v1 = vld [vmem:[%s2938_s1 + $0x8] sm:$0xff]  ;;  %v32_v2 = vld [vmem:[%s2938_s1 + $0x10] sm:$0xff] }
   0x2   :  { %v2159_v3 = vpack.c.bf16 %v31_v1, %v30_v0  ;;  %v33_v4 = vld [vmem:[%s2938_s1 + $0x18] sm:$0xff]  ;;  %v27_v5 = vld [vmem:[%s2937_s0] sm:$0xff] }
   0x3   :  { %v2163_v6 = vpack.c.bf16 %v33_v4, %v32_v2  ;;  %2136 = vmatprep.mubr.msk.f32.mxu0 %vm34_vm0, %v27_v5 }
   0x4   :  { %12 = vsyncpa [#allocation3], 0  ;;  %2160 = vmatprep.subr.bf16.mxu0 %v2159_v3  ;;  %v28_v7 = vld [vmem:[%s2937_s0 + $0x8] sm:$0xff]  ;;  %v1980_v8 = vld [vmem:[%s2940_s3] ss:$0 sm:$0xff]  ;;  %vm134_vm1 = vcmask 64512  }
   0x5   :  { %2162 = vmatpush3.bf16.msra.mxu0 %v2159_v3  ;;  %v1981_v11 = vld [vmem:[%s2941_s4] ss:$0 sm:$0xff]  ;;  %v2371_v28 = vmov 0.0   ;;  %vm2372_vm2 = vmmov 0   ;;  %v2373_v35 = vmov 1.0   ;;  %v2374_v38 = vmov 0  }
   0x6   :  { %2164 = vmatprep.subr.bf16.mxu0 %v2163_v6  ;;  %2139 = vmatprep.subr.mxu1 %v2371_v28  ;;  %v29_v47 = vld [vmem:[%s2939_s2] sm:$0xff]  ;;  %v1987_v58 = vld [vmem:[%s2942_s5 + $0x88] sm:$0xff]  ;;  %v1989_v60 = vld [vmem:[%s2942_s5 + $0x98] sm:$0xff]  ;;  %vm561_vm3 = vcmask 1040384  }
   0x7   :  { %2141 = vmatprep.mubr.msk.f32.mxu1 %vm2372_vm2, %v2371_v28  ;;  %2140 = vmatpush3.msra.mxu1 %v27_v5  ;;  %v1991_v59 = vld [vmem:[%s2942_s5 + $0xa8] sm:$0xff]  ;;  %v1993_v62 = vld [vmem:[%s2942_s5 + $0xb8] sm:$0xff]  ;;  %v1986_v63 = vld [vmem:[%s2942_s5 + $0x80] sm:$0xff] }
   0x8   :  { %2144 = vmatprep.subr.mxu1 %v2371_v28  ;;  %v2167_v61 = vpack.c.bf16 %v1991_v59, %v1987_v58  ;;  %v1990_v0 = vld [vmem:[%s2942_s5 + $0xa0] sm:$0xff]  ;;  %v2175_v1 = vpack.c.bf16 %v1993_v62, %v1989_v60  ;;  %v1988_v3 = vld [vmem:[%s2942_s5 + $0x90] sm:$0xff]  ;;  %v572_v59 = vld [vmem:[%s2942_s5 + $0x48] sm:$0xff] }
   0x9   :  { %2166 = vmatpush3.bf16.msra.mxu0 %v2163_v6  ;;  %v2169_v2 = vpack.c.bf16 %v1990_v0, %v1986_v63  ;;  %v1992_v4 = vld [vmem:[%s2942_s5 + $0xb0] sm:$0xff]  ;;  %v1995_v6 = vld [vmem:[%s2942_s5 + $0xc8] sm:$0xff]  ;;  %v574_v62 = vld [vmem:[%s2942_s5 + $0x58] sm:$0xff] }
   0xa   :  { %2154 = vmatprep.subr.mxu0 %v2371_v28  ;;  %v2177_v5 = vpack.c.bf16 %v1992_v4, %v1988_v3  ;;  %v569_v58 = vld [vmem:[%s2942_s5 + $0x30] sm:$0xff]  ;;  %v578_v63 = vld [vmem:[%s2942_s5 + $0x78] sm:$0xff]  ;;  %v571_v3 = vld [vmem:[%s2942_s5 + $0x40] sm:$0xff] }
   0xb   :  { %v575_v4 = vld [vmem:[%s2942_s5 + $0x60] sm:$0xff] }
   0xc   :  { %2137 = vmatmul.mubr.msk.f32.vlgmr.msra.gmra.mrb[0].mxu0 %vm34_vm0, %v28_v7 }
   0xd   :  { %2156 = vmatprep.mubr.msk.f32.mxu0 %vm2372_vm2, %v2371_v28  ;;  %2155 = vmatpush3.msra.mxu0 %v2373_v35 }
   0xe   :  { %2176 = vmatprep.subr.bf16.mxu0 %v2175_v1 }
  0xdf   :  { %v2138_v9 = vpop.f32.mrb[0].mxu0 }
  0xe0   :  { %v107_v10 = vpop.f32.mrb[1].mxu0  ;;  %v124_v12 = vmul.f32 %v2138_v9, %v1980_v8 }
  0xe1   :  { %v123_v13 = vmul.f32 %v1980_v8, %v107_v10  ;;  %v1997_v8 = vld [vmem:[%s2942_s5 + $0xd8] sm:$0xff] }
  0xe2   :  { %v133_v16 = vadd.f32 %v1981_v11, %v124_v12  ;;  %v2001_v10 = vld [vmem:[%s2942_s5 + $0xf8] sm:$0xff]  ;;  %v1998_v12 = vld [vmem:[%s2942_s5 + $0xe0] sm:$0xff] }
  0xe3   :  { %v132_v14 = vadd.f32 %v1981_v11, %v123_v13  ;;  %v1994_v11 = vld [vmem:[%s2942_s5 + $0xc0] sm:$0xff]  ;;  %v2179_v13 = vpack.c.bf16 %v2001_v10, %v1997_v8  ;;  %v2007_v8 = vld [vmem:[%s2942_s5 + $0x108] sm:$0xff] }
  0xe4   :  { %v138_v17 = vsel %vm134_vm1, %v133_v16, -inf  ;;  %v2011_v10 = vld [vmem:[%s2942_s5 + $0x128] sm:$0xff] }
  0xe5   :  { %v135_v15 = vsel %vm134_vm1, %v132_v14, -inf }
  0xe6   :  { %136 = vmax.xlane.f32.xlu0 %v135_v15  ;;  %v1996_v15 = vld [vmem:[%s2942_s5 + $0xd0] sm:$0xff] }
  0xea   :  { %139 = vmax.xlane.f32.xlu0 %v138_v17  ;;  %v564_v17 = vld [vmem:[%s2942_s5 + $0x8] sm:$0xff] }
 0x173   :  { %v137_v18 = vpop.xlane.xlu0 %136 }
 0x174   :  { %v141_v19 = vsub.f32 %v132_v14, %v137_v18  ;;  %v2173_v14 = vpack.c.bf16 %v1998_v12, %v1994_v11  ;;  %v2009_v11 = vld [vmem:[%s2942_s5 + $0x118] sm:$0xff] }
 0x175   :  { %v2013_v12 = vld [vmem:[%s2942_s5 + $0x138] sm:$0xff] }
 0x176   :  { %v143_v20 = vmul.f32 1.442695, %v141_v19  ;;  %v568_v19 = vld [vmem:[%s2942_s5 + $0x28] sm:$0xff] }
 0x177   :  { %v140_v21 = vpop.xlane.xlu0 %139 }
 0x178   :  { %2331 = vpow2.f32 %v143_v20  ;;  %v142_v22 = vsub.f32 %v133_v16, %v140_v21  ;;  %v2000_v16 = vld [vmem:[%s2942_s5 + $0xf0] sm:$0xff]  ;;  %v566_v20 = vld [vmem:[%s2942_s5 + $0x18] sm:$0xff] }
 0x179   :  { %v2181_v18 = vpack.c.bf16 %v2000_v16, %v1996_v15  ;;  %v570_v21 = vld [vmem:[%s2942_s5 + $0x38] sm:$0xff]  ;;  %v2006_v15 = vld [vmem:[%s2942_s5 + $0x100] sm:$0xff] }
 0x17a   :  { %v145_v23 = vmul.f32 1.442695, %v142_v22  ;;  %v2183_v22 = vpack.c.bf16 %v568_v19, %v564_v17  ;;  %v2010_v16 = vld [vmem:[%s2942_s5 + $0x120] sm:$0xff]  ;;  %v2199_v17 = vpack.c.bf16 %v2011_v10, %v2007_v8  ;;  %v2008_v19 = vld [vmem:[%s2942_s5 + $0x110] sm:$0xff] }
 0x17b   :  { %v2046_v8 = vld [vmem:[%s2942_s5 + $0x220] sm:$0xff] }
 0x17c   :  { %2333 = vpow2.f32 %v145_v23  ;;  %v2191_v23 = vpack.c.bf16 %v570_v21, %v566_v20  ;;  %v2012_v20 = vld [vmem:[%s2942_s5 + $0x130] sm:$0xff]  ;;  %v2015_v21 = vld [vmem:[%s2942_s5 + $0x148] sm:$0xff] }
 0x182   :  { %v2332_v24 = vpop.eup %2331 }
 0x183   :  { %v147_v25 = vsel %vm134_vm1, %v2332_v24, 0.0 }
 0x184   :  { %148 = vadd.xlane.f32.xlu1 %v147_v25 }
 0x186   :  { %v2334_v26 = vpop.eup %2333 }
 0x187   :  { %v150_v27 = vsel %vm134_vm1, %v2334_v26, 0.0 }
 0x188   :  { %151 = vadd.xlane.f32.xlu1 %v150_v27 }
 0x211   :  { %v149_v29 = vpop.xlane.xlu1 %148 }
 0x212   :  { %2335 = vrcp.f32 %v149_v29 }
 0x215   :  { %v152_v30 = vpop.xlane.xlu1 %151 }
 0x216   :  { %2337 = vrcp.f32 %v152_v30 }
 0x21c   :  { %v2336_v31 = vpop.eup %2335 }
 0x21d   :  { %v155_v32 = vmul.f32 %v2336_v31, %v2332_v24 }
 0x21f   :  { %158 = vxpose.xlu0.b32.start.end [1/1] (short) (narrow) %v155_v32, 8 }
 0x220   :  { %v2338_v33 = vpop.eup %2337 }
 0x221   :  { %v156_v34 = vmul.f32 %v2338_v33, %v2334_v26 }
 0x223   :  { %358 = vxpose.xlu1.b32.start.end [1/1] (short) (narrow) %v156_v34, 8 }
 0x241   :  { %2330 = vset.pattern.permute.xlu1 %v2374_v38 }
 0x248   :  { %2329 = vset.pattern.permute.xlu0 %v2374_v38 }
 0x29f   :  { %v174_v36 = vpop.trf.xlu0 }
 0x2a0   :  { %2142 = vmatmul.mubr.msk.f32.vlgmr.msra.gmra.mrb[0].mxu1 %vm134_vm1, %v174_v36 }
 0x2a1   :  { %2145 = vmatpush3.msra.mxu1 %v2373_v35  ;;  %2146 = vmatprep.mubr.msk.f32.mxu1 %vm2372_vm2, %v2371_v28 }
 0x2a2   :  { %2149 = vmatprep.subr.mxu1 %v2371_v28 }
 0x2a3   :  { %v374_v37 = vpop.trf.xlu1 }
 0x2a4   :  { %2147 = vmatmul.mubr.msk.f32.vlgmr.msra.gmra.mrb[2].mxu1 %vm134_vm1, %v174_v36  ;;  %2157 = vmatmul.mubr.msk.f32.vlgmr.msra.gmra.mrb[2].mxu0 %vm134_vm1, %v374_v37 }
 0x2a5   :  { %2150 = vmatpush3.msra.mxu1 %v28_v7  ;;  %2151 = vmatprep.mubr.msk.f32.mxu1 %vm2372_vm2, %v2371_v28  ;;  %v1999_v7 = vld [vmem:[%s2942_s5 + $0xe8] sm:$0xff] }
 0x2a6   :  { %738 = vmatprep.mubr.f32.mxu0 %v2371_v28  ;;  %2168 = vmatprep.subr.bf16.mxu1 %v2167_v61  ;;  %v2171_v9 = vpack.c.bf16 %v1999_v7, %v1995_v6  ;;  %v576_v61 = vld [vmem:[%s2942_s5 + $0x68] sm:$0xff]  ;;  %v2195_v6 = vpack.c.bf16 %v578_v63, %v574_v62  ;;  %v573_v7 = vld [vmem:[%s2942_s5 + $0x50] sm:$0xff] }
 0x2a7   :  { %2178 = vmatpush1.bf16.msra.mxu0 %v2177_v5  ;;  %v2187_v5 = vpack.c.bf16 %v576_v61, %v572_v59  ;;  %v2036_v59 = vld [vmem:[%s2942_s5 + $0x1e0] sm:$0xff]  ;;  %v2034_v63 = vld [vmem:[%s2942_s5 + $0x1d0] sm:$0xff] }
 0x2a8   :  { %2152 = vmatmul.mubr.msk.f32.vlgmr.msra.gmra.mrb[4].mxu1 %vm134_vm1, %v374_v37  ;;  %2180 = vmatprep.subr.bf16.mxu0 %v2179_v13  ;;  %v2189_v13 = vpack.c.bf16 %v575_v4, %v571_v3  ;;  %v2047_v3 = vld [vmem:[%s2942_s5 + $0x228] sm:$0xff]  ;;  %v2045_v4 = vld [vmem:[%s2942_s5 + $0x218] sm:$0xff] }
 0x2a9   :  { %667 = vmatprep.mubr.f32.mxu1 %v2371_v28  ;;  %2170 = vmatpush1.bf16.msra.mxu1 %v2169_v2 }
 0x2aa   :  { %2172 = vmatprep.subr.bf16.mxu1 %v2171_v9 }
 0x2ab   :  { %2182 = vmatpush1.bf16.msra.mxu0 %v2181_v18  ;;  %v2207_v18 = vpack.c.bf16 %v2013_v12, %v2009_v11  ;;  %v2044_v11 = vld [vmem:[%s2942_s5 + $0x210] sm:$0xff] }
 0x2ac   :  { %2192 = vmatprep.subr.bf16.mxu0 %v2191_v23  ;;  %v2019_v23 = vld [vmem:[%s2942_s5 + $0x168] sm:$0xff]  ;;  %v2048_v12 = vld [vmem:[%s2942_s5 + $0x230] sm:$0xff] }
 0x2ad   :  { %2174 = vmatpush1.bf16.msra.mxu1 %v2173_v14 }
 0x2ae   :  { %2184 = vmatprep.subr.bf16.mxu1 %v2183_v22 }
 0x373   :  { %v259_v39 = vpop.f32.mrb[0].mxu1 }
 0x374   :  { %v2143_v40 = vpop.f32.mrb[1].mxu1 }
 0x377   :  { %v329_v41 = vpop.f32.mrb[2].mxu1  ;;  %v529_v42 = vpop.f32.mrb[2].mxu0 }
 0x378   :  { %535 = vperm.xlu1 %2330, %v529_v42   ;;  %335 = vperm.xlu0 %2329, %v329_v41   ;;  %v2148_v43 = vpop.f32.mrb[3].mxu1  ;;  %v2158_v44 = vpop.f32.mrb[3].mxu0 }
 0x37b   :  { %v459_v45 = vpop.f32.mrb[4].mxu1 }
 0x37c   :  { %v2153_v46 = vpop.f32.mrb[5].mxu1 }
 0x3f7   :  { %v536_v48 = vpop.permute.xlu1 %535  ;;  %v336_v49 = vpop.permute.xlu0 %335 }
 0x3f8   :  { %v538_v50 = vmul.f32 %v536_v48, %v29_v47  ;;  %v338_v51 = vmul.f32 %v336_v49, %v29_v47 }
 0x3fa   :  { %v2468_v52 = vsub.f32 %v459_v45, %v538_v50  ;;  %v2470_v53 = vsub.f32 %v259_v39, %v338_v51 }
 0x3fc   :  { %v340_v54 = vmul.f32 %v2470_v53, %v2470_v53  ;;  %v540_v55 = vmul.f32 %v2468_v52, %v2468_v52 }
 0x3fe   :  { %v341_v56 = vsel %vm34_vm0, %v340_v54, 0.0  ;;  %v541_v57 = vsel %vm34_vm0, %v540_v55, 0.0  ;;  %v563_v54 = vld [vmem:[%s2942_s5] sm:$0xff] }
 0x3ff   :  { %342 = vadd.xlane.f32.xlu1 %v341_v56  ;;  %542 = vadd.xlane.f32.xlu0 %v541_v57  ;;  %v567_v55 = vld [vmem:[%s2942_s5 + $0x20] sm:$0xff]  ;;  %v565_v57 = vld [vmem:[%s2942_s5 + $0x10] sm:$0xff] }
 0x400   :  { %v2193_v2 = vpack.c.bf16 %v569_v58, %v565_v57  ;;  %v2032_v58 = vld [vmem:[%s2942_s5 + $0x1c0] sm:$0xff] }
 0x48c   :  { %v343_v24 = vpop.xlane.xlu1 %342  ;;  %v543_v25 = vpop.xlane.xlu0 %542 }
 0x48d   :  { %v344_v26 = vmax.f32 %v343_v24, 1e-24  ;;  %v544_v27 = vmax.f32 %v543_v25, 1e-24 }
 0x48f   :  { %2339 = vrsqrt.f32 %v344_v26  ;;  %v2201_v26 = vpack.c.bf16 %v2010_v16, %v2006_v15  ;;  %v2055_v16 = vld [vmem:[%s2942_s5 + $0x268] sm:$0xff] }
 0x490   :  { %2341 = vrsqrt.f32 %v544_v27  ;;  %v2209_v27 = vpack.c.bf16 %v2012_v20, %v2008_v19  ;;  %v2241_v20 = vpack.c.bf16 %v2048_v12, %v2044_v11  ;;  %v2093_v11 = vld [vmem:[%s2942_s5 + $0x378] sm:$0xff] }
 0x499   :  { %v2340_v29 = vpop.eup %2339 }
 0x49a   :  { %v2342_v30 = vpop.eup %2341  ;;  %v346_v31 = vmul.f32 %v2340_v29, %v2340_v29 }
 0x49b   :  { %v546_v32 = vmul.f32 %v2342_v30, %v2342_v30 }
 0x49c   :  { %v347_v33 = vmul.f32 %v346_v31, %v343_v24  ;;  %v2017_v24 = vld [vmem:[%s2942_s5 + $0x158] sm:$0xff]  ;;  %v2203_v31 = vpack.c.bf16 %v2019_v23, %v2015_v21  ;;  %v2050_v21 = vld [vmem:[%s2942_s5 + $0x240] sm:$0xff] }
 0x49d   :  { %v547_v34 = vmul.f32 %v546_v32, %v543_v25  ;;  %v2021_v25 = vld [vmem:[%s2942_s5 + $0x178] sm:$0xff] }
 0x49e   :  { %v348_v35 = vrot.slane %v347_v33, 4  ;;  %v2211_v32 = vpack.c.bf16 %v2021_v25, %v2017_v24  ;;  %v2052_v25 = vld [vmem:[%s2942_s5 + $0x250] sm:$0xff] }
 0x49f   :  { %v548_v36 = vrot.slane %v547_v34, 4 }
 0x4a0   :  { %v349_v37 = vadd.f32 %v348_v35, %v347_v33  ;;  %v2016_v33 = vld [vmem:[%s2942_s5 + $0x150] sm:$0xff]  ;;  %v2025_v35 = vld [vmem:[%s2942_s5 + $0x188] sm:$0xff] }
 0x4a1   :  { %v549_v38 = vadd.f32 %v548_v36, %v547_v34  ;;  %v2020_v34 = vld [vmem:[%s2942_s5 + $0x170] sm:$0xff] }
 0x4a2   :  { %v350_v39 = vrot.slane %v349_v37, 2 }
 0x4a3   :  { %v550_v40 = vrot.slane %v549_v38, 2 }
 0x4a4   :  { %v351_v41 = vadd.f32 %v350_v39, %v349_v37  ;;  %v2029_v37 = vld [vmem:[%s2942_s5 + $0x1a8] sm:$0xff]  ;;  %v2031_v39 = vld [vmem:[%s2942_s5 + $0x1b8] sm:$0xff] }
 0x4a5   :  { %v551_v42 = vadd.f32 %v550_v40, %v549_v38  ;;  %v2027_v38 = vld [vmem:[%s2942_s5 + $0x198] sm:$0xff] }
 0x4a6   :  { %v352_v43 = vrot.slane %v351_v41, 1 }
 0x4a7   :  { %v552_v44 = vrot.slane %v551_v42, 1 }
 0x4a8   :  { %v353_v45 = vadd.f32 %v352_v43, %v351_v41  ;;  %v2213_v41 = vpack.c.bf16 %v2020_v34, %v2016_v33  ;;  %v2028_v43 = vld [vmem:[%s2942_s5 + $0x1a0] sm:$0xff] }
 0x4a9   :  { %v553_v46 = vadd.f32 %v552_v44, %v551_v42  ;;  %v2024_v42 = vld [vmem:[%s2942_s5 + $0x180] sm:$0xff]  ;;  %v2215_v44 = vpack.c.bf16 %v2029_v37, %v2025_v35 }
 0x4aa   :  { %v354_v47 = vmax.f32 %v353_v45, 1e-24  ;;  %v2223_v45 = vpack.c.bf16 %v2031_v39, %v2027_v38  ;;  %v2060_v35 = vld [vmem:[%s2942_s5 + $0x280] sm:$0xff]  ;;  %v2062_v39 = vld [vmem:[%s2942_s5 + $0x290] sm:$0xff] }
 0x4ab   :  { %v554_v48 = vmax.f32 %v553_v46, 1e-24  ;;  %v2026_v46 = vld [vmem:[%s2942_s5 + $0x190] sm:$0xff] }
 0x4ac   :  { %2343 = vrsqrt.f32 %v354_v47  ;;  %v2030_v47 = vld [vmem:[%s2942_s5 + $0x1b0] sm:$0xff] }
 0x4ad   :  { %2345 = vrsqrt.f32 %v554_v48  ;;  %v2033_v48 = vld [vmem:[%s2942_s5 + $0x1c8] sm:$0xff]  ;;  %v2225_v57 = vpack.c.bf16 %v2030_v47, %v2026_v46  ;;  %v2075_v46 = vld [vmem:[%s2942_s5 + $0x2f8] sm:$0xff] }
 0x4b6   :  { %v2344_v49 = vpop.eup %2343 }
 0x4b7   :  { %v2346_v50 = vpop.eup %2345  ;;  %v356_v51 = vmul.f32 %v2344_v49, %v2340_v29  ;;  %v2014_v29 = vld [vmem:[%s2942_s5 + $0x140] sm:$0xff] }
 0x4b8   :  { %v556_v56 = vmul.f32 %v2346_v50, %v2342_v30  ;;  %v2018_v30 = vld [vmem:[%s2942_s5 + $0x160] sm:$0xff] }
 0x4b9   :  { %v2554_v60 = vmul.f32 %v356_v51, %v2470_v53  ;;  %v2185_v53 = vpack.c.bf16 %v567_v55, %v563_v54  ;;  %v2205_v40 = vpack.c.bf16 %v2018_v30, %v2014_v29  ;;  %v2037_v51 = vld [vmem:[%s2942_s5 + $0x1e8] sm:$0xff]  ;;  %v2035_v54 = vld [vmem:[%s2942_s5 + $0x1d8] sm:$0xff] }
 0x4ba   :  { %v2566_v0 = vmul.f32 %v556_v56, %v2468_v52  ;;  %v577_v52 = vld [vmem:[%s2942_s5 + $0x70] sm:$0xff]  ;;  %v2039_v55 = vld [vmem:[%s2942_s5 + $0x1f8] sm:$0xff]  ;;  %v2217_v56 = vpack.c.bf16 %v2028_v43, %v2024_v42  ;;  %v2219_v61 = vpack.c.bf16 %v2037_v51, %v2033_v48  ;;  %v2065_v30 = vld [vmem:[%s2942_s5 + $0x2a8] sm:$0xff] }
 0x4bb   :  { %v580_v1 = vrot.slane %v2554_v60, 1  ;;  %v2197_v14 = vpack.c.bf16 %v577_v52, %v573_v7  ;;  %v890_v49 = vrot.slane %v2554_v60, 2  ;;  %v2227_v62 = vpack.c.bf16 %v2039_v55, %v2035_v54  ;;  %v2042_v52 = vld [vmem:[%s2942_s5 + $0x200] sm:$0xff]  ;;  %v2070_v55 = vld [vmem:[%s2942_s5 + $0x2d0] sm:$0xff] }
 0x4bc   :  { %v559_v22 = vrot.slane %v2566_v0, 7  ;;  %v892_v50 = vrot.slane %v2566_v0, 1  ;;  %v1063_v15 = vrot.slane %v2566_v0, 2  ;;  %v2233_v19 = vpack.c.bf16 %v2046_v8, %v2042_v52 }
 0x4bd   :  { %v582_v9 = vsel %vm561_vm3, %v580_v1, %v2566_v0  ;;  %v2038_v1 = vld [vmem:[%s2942_s5 + $0x1f0] sm:$0xff]  ;;  %v1232_v42 = vrot.slane %v2554_v60, 4  ;;  %v1234_v43 = vrot.slane %v2566_v0, 3  ;;  %v1403_v52 = vrot.slane %v2554_v60, 5 }
 0x4be   :  { %2002 = vmatmul.mubr.msk.f32.vlgmr.msra.gmra.mrb[6].mxu1 %vm34_vm0, %v582_v9  ;;  %2003 = vmatmul.mubr.msk.f32.vlgmr.msra.gmra.mrb[4].mxu0 %vm34_vm0, %v582_v9  ;;  %v562_v36 = vsel %vm561_vm3, %v2554_v60, %v559_v22  ;;  %v2229_v7 = vpack.c.bf16 %v2038_v1, %v2034_v63  ;;  %v2054_v22 = vld [vmem:[%s2942_s5 + $0x260] sm:$0xff]  ;;  %v1405_v8 = vrot.slane %v2566_v0, 4 }
 0x4bf   :  { %2186 = vmatpush1.bf16.msra.mxu1 %v2185_v53  ;;  %2194 = vmatpush1.bf16.msra.mxu0 %v2193_v2  ;;  %v2043_v53 = vld [vmem:[%s2942_s5 + $0x208] sm:$0xff]  ;;  %v894_v2 = vsel %vm561_vm3, %v890_v49, %v892_v50  ;;  %v2237_v33 = vpack.c.bf16 %v2054_v22, %v2050_v21  ;;  %v2068_v49 = vld [vmem:[%s2942_s5 + $0x2c0] sm:$0xff] }
 0x4c0   :  { %2188 = vmatprep.subr.bf16.mxu1 %v2187_v5  ;;  %2196 = vmatprep.subr.bf16.mxu0 %v2195_v6  ;;  %v2049_v5 = vld [vmem:[%s2942_s5 + $0x238] sm:$0xff]  ;;  %v2221_v6 = vpack.c.bf16 %v2036_v59, %v2032_v58  ;;  %v2231_v9 = vpack.c.bf16 %v2047_v3, %v2043_v53  ;;  %v2072_v50 = vld [vmem:[%s2942_s5 + $0x2e0] sm:$0xff]  ;;  %v1236_v58 = vsel %vm561_vm3, %v1232_v42, %v1234_v43  ;;  %v2083_v59 = vld [vmem:[%s2942_s5 + $0x328] sm:$0xff] }
 0x4c1   :  { %812 = vmatprep.mubr.f32.mxu1 %v2371_v28  ;;  %883 = vmatprep.mubr.f32.mxu0 %v2371_v28  ;;  %v2239_v10 = vpack.c.bf16 %v2049_v5, %v2045_v4  ;;  %v2253_v63 = vpack.c.bf16 %v2072_v50, %v2068_v49  ;;  %v2078_v53 = vld [vmem:[%s2942_s5 + $0x300] sm:$0xff]  ;;  %v2080_v5 = vld [vmem:[%s2942_s5 + $0x310] sm:$0xff]  ;;  %v1407_v21 = vsel %vm561_vm3, %v1403_v52, %v1405_v8  ;;  %v2101_v22 = vld [vmem:[%s2942_s5 + $0x3a8] sm:$0xff] }
 0x4c2   :  { %v2104_v42 = vld [vmem:[%s2942_s5 + $0x3c0] sm:$0xff] }
 0x4c3   :  { %2190 = vmatpush1.bf16.msra.mxu1 %v2189_v13  ;;  %2198 = vmatpush1.bf16.msra.mxu0 %v2197_v14  ;;  %v2051_v13 = vld [vmem:[%s2942_s5 + $0x248] sm:$0xff]  ;;  %v1061_v14 = vrot.slane %v2554_v60, 3 }
 0x4c4   :  { %2200 = vmatprep.subr.bf16.mxu1 %v2199_v17  ;;  %2208 = vmatprep.subr.bf16.mxu0 %v2207_v18  ;;  %v2053_v17 = vld [vmem:[%s2942_s5 + $0x258] sm:$0xff]  ;;  %v2235_v23 = vpack.c.bf16 %v2055_v16, %v2051_v13 }
 0x4c5   :  { %v2057_v18 = vld [vmem:[%s2942_s5 + $0x278] sm:$0xff]  ;;  %v1065_v29 = vsel %vm561_vm3, %v1061_v14, %v1063_v15  ;;  %v2086_v14 = vld [vmem:[%s2942_s5 + $0x340] sm:$0xff] }
 0x4c6   :  { %2004 = vmatmul.mubr.msk.f32.vlgmr.msra.gmra.mrb[6].mxu1 %vm34_vm0, %v562_v36  ;;  %2005 = vmatmul.mubr.msk.f32.vlgmr.msra.gmra.mrb[4].mxu0 %vm34_vm0, %v562_v36  ;;  %v2243_v24 = vpack.c.bf16 %v2057_v18, %v2053_v17  ;;  %v2064_v36 = vld [vmem:[%s2942_s5 + $0x2a0] sm:$0xff]  ;;  %v2088_v18 = vld [vmem:[%s2942_s5 + $0x350] sm:$0xff] }
 0x4c7   :  { %2202 = vmatpush1.bf16.msra.mxu1 %v2201_v26  ;;  %2210 = vmatpush1.bf16.msra.mxu0 %v2209_v27  ;;  %v2056_v26 = vld [vmem:[%s2942_s5 + $0x270] sm:$0xff]  ;;  %v2061_v27 = vld [vmem:[%s2942_s5 + $0x288] sm:$0xff]  ;;  %v2249_v47 = vpack.c.bf16 %v2064_v36, %v2060_v35  ;;  %v2090_v15 = vld [vmem:[%s2942_s5 + $0x360] sm:$0xff]  ;;  %v1574_v35 = vrot.slane %v2554_v60, 6  ;;  %v1576_v36 = vrot.slane %v2566_v0, 5 }
 0x4c8   :  { %2204 = vmatprep.subr.bf16.mxu1 %v2203_v31  ;;  %2212 = vmatprep.subr.bf16.mxu0 %v2211_v32  ;;  %v2063_v31 = vld [vmem:[%s2942_s5 + $0x298] sm:$0xff]  ;;  %v2245_v34 = vpack.c.bf16 %v2056_v26, %v2052_v25  ;;  %v2247_v37 = vpack.c.bf16 %v2065_v30, %v2061_v27  ;;  %v2269_v25 = vpack.c.bf16 %v2090_v15, %v2086_v14  ;;  %v2096_v27 = vld [vmem:[%s2942_s5 + $0x380] sm:$0xff] }
 0x4c9   :  { %979 = vmatprep.mubr.f32.mxu1 %v2371_v28  ;;  %1050 = vmatprep.mubr.f32.mxu0 %v2371_v28  ;;  %v2067_v32 = vld [vmem:[%s2942_s5 + $0x2b8] sm:$0xff] }
 0x4ca   :  { %v2255_v38 = vpack.c.bf16 %v2067_v32, %v2063_v31  ;;  %v2098_v32 = vld [vmem:[%s2942_s5 + $0x390] sm:$0xff] }
 0x4cb   :  { %2206 = vmatpush1.bf16.msra.mxu1 %v2205_v40  ;;  %2214 = vmatpush1.bf16.msra.mxu0 %v2213_v41  ;;  %v2066_v40 = vld [vmem:[%s2942_s5 + $0x2b0] sm:$0xff]  ;;  %v2069_v41 = vld [vmem:[%s2942_s5 + $0x2c8] sm:$0xff] }
 0x4cc   :  { %2216 = vmatprep.subr.bf16.mxu1 %v2215_v44  ;;  %2224 = vmatprep.subr.bf16.mxu0 %v2223_v45  ;;  %v2073_v44 = vld [vmem:[%s2942_s5 + $0x2e8] sm:$0xff]  ;;  %v2071_v45 = vld [vmem:[%s2942_s5 + $0x2d8] sm:$0xff]  ;;  %v2257_v48 = vpack.c.bf16 %v2066_v40, %v2062_v39 }
 0x4cd   :  { %v2251_v51 = vpack.c.bf16 %v2073_v44, %v2069_v41  ;;  %v2259_v54 = vpack.c.bf16 %v2075_v46, %v2071_v45  ;;  %v2111_v39 = vld [vmem:[%s2942_s5 + $0x3f8] sm:$0xff]  ;;  %v2108_v45 = vld [vmem:[%s2942_s5 + $0x3e0] sm:$0xff]  ;;  %v2106_v46 = vld [vmem:[%s2942_s5 + $0x3d0] sm:$0xff] }
 0x4ce   :  { %2022 = vmatmul.mubr.msk.f32.vlgmr.msra.gmra.mrb[6].mxu1 %vm34_vm0, %v894_v2  ;;  %2023 = vmatmul.mubr.msk.f32.vlgmr.msra.gmra.mrb[4].mxu0 %vm34_vm0, %v894_v2  ;;  %v2082_v2 = vld [vmem:[%s2942_s5 + $0x320] sm:$0xff]  ;;  %v2285_v49 = vpack.c.bf16 %v2108_v45, %v2104_v42 }
 0x4cf   :  { %2218 = vmatpush1.bf16.msra.mxu1 %v2217_v56  ;;  %2226 = vmatpush1.bf16.msra.mxu0 %v2225_v57  ;;  %v2074_v56 = vld [vmem:[%s2942_s5 + $0x2f0] sm:$0xff]  ;;  %v2079_v57 = vld [vmem:[%s2942_s5 + $0x308] sm:$0xff]  ;;  %v2265_v12 = vpack.c.bf16 %v2082_v2, %v2078_v53 }
 0x4d0   :  { %2220 = vmatprep.subr.bf16.mxu1 %v2219_v61  ;;  %2228 = vmatprep.subr.bf16.mxu0 %v2227_v62  ;;  %v2081_v61 = vld [vmem:[%s2942_s5 + $0x318] sm:$0xff]  ;;  %v2261_v1 = vpack.c.bf16 %v2074_v56, %v2070_v55  ;;  %v2263_v3 = vpack.c.bf16 %v2083_v59, %v2079_v57  ;;  %v1917_v56 = vlaneseq }
 0x4d1   :  { %1150 = vmatprep.mubr.f32.mxu1 %v2371_v28  ;;  %1221 = vmatprep.mubr.f32.mxu0 %v2371_v28  ;;  %v2085_v62 = vld [vmem:[%s2942_s5 + $0x338] sm:$0xff] }
 0x4d2   :  { %v2271_v4 = vpack.c.bf16 %v2085_v62, %v2081_v61  ;;  %v1918_v57 = vshrl.u32 %v1917_v56, 7  ;;  %v2375_v62 = vmov 1983009808  }
 0x4d3   :  { %2222 = vmatpush1.bf16.msra.mxu1 %v2221_v6  ;;  %2230 = vmatpush1.bf16.msra.mxu0 %v2229_v7  ;;  %v2084_v6 = vld [vmem:[%s2942_s5 + $0x330] sm:$0xff]  ;;  %v2087_v7 = vld [vmem:[%s2942_s5 + $0x348] sm:$0xff] }
 0x4d4   :  { %2232 = vmatprep.subr.bf16.mxu1 %v2231_v9  ;;  %2240 = vmatprep.subr.bf16.mxu0 %v2239_v10  ;;  %v2091_v9 = vld [vmem:[%s2942_s5 + $0x368] sm:$0xff]  ;;  %v2089_v10 = vld [vmem:[%s2942_s5 + $0x358] sm:$0xff]  ;;  %v2273_v13 = vpack.c.bf16 %v2084_v6, %v2080_v5  ;;  %v1927_v59 = vsub.s32 2, %v1918_v57  ;;  %v1923_v61 = vsub.s32 1, %v1918_v57 }
 0x4d5   :  { %v2267_v16 = vpack.c.bf16 %v2091_v9, %v2087_v7  ;;  %v2275_v17 = vpack.c.bf16 %v2093_v11, %v2089_v10 }
 0x4d6   :  { %2040 = vmatmul.mubr.msk.f32.vlgmr.msra.gmra.mrb[6].mxu1 %vm34_vm0, %v1065_v29  ;;  %2041 = vmatmul.mubr.msk.f32.vlgmr.msra.gmra.mrb[4].mxu0 %vm34_vm0, %v1065_v29  ;;  %v2100_v29 = vld [vmem:[%s2942_s5 + $0x3a0] sm:$0xff] }
 0x4d7   :  { %2234 = vmatpush1.bf16.msra.mxu1 %v2233_v19  ;;  %2242 = vmatpush1.bf16.msra.mxu0 %v2241_v20  ;;  %v2092_v19 = vld [vmem:[%s2942_s5 + $0x370] sm:$0xff]  ;;  %v2097_v20 = vld [vmem:[%s2942_s5 + $0x388] sm:$0xff]  ;;  %v2281_v40 = vpack.c.bf16 %v2100_v29, %v2096_v27 }
 0x4d8   :  { %2236 = vmatprep.subr.bf16.mxu1 %v2235_v23  ;;  %2244 = vmatprep.subr.bf16.mxu0 %v2243_v24  ;;  %v2099_v23 = vld [vmem:[%s2942_s5 + $0x398] sm:$0xff]  ;;  %v2277_v26 = vpack.c.bf16 %v2092_v19, %v2088_v18  ;;  %v2279_v30 = vpack.c.bf16 %v2101_v22, %v2097_v20 }
 0x4d9   :  { %1321 = vmatprep.mubr.f32.mxu1 %v2371_v28  ;;  %1392 = vmatprep.mubr.f32.mxu0 %v2371_v28  ;;  %v2103_v24 = vld [vmem:[%s2942_s5 + $0x3b8] sm:$0xff] }
 0x4da   :  { %v2287_v31 = vpack.c.bf16 %v2103_v24, %v2099_v23 }
 0x4db   :  { %2238 = vmatpush1.bf16.msra.mxu1 %v2237_v33  ;;  %2246 = vmatpush1.bf16.msra.mxu0 %v2245_v34  ;;  %v2102_v33 = vld [vmem:[%s2942_s5 + $0x3b0] sm:$0xff]  ;;  %v2105_v34 = vld [vmem:[%s2942_s5 + $0x3c8] sm:$0xff] }
 0x4dc   :  { %2248 = vmatprep.subr.bf16.mxu1 %v2247_v37  ;;  %2256 = vmatprep.subr.bf16.mxu0 %v2255_v38  ;;  %v2109_v37 = vld [vmem:[%s2942_s5 + $0x3e8] sm:$0xff]  ;;  %v2107_v38 = vld [vmem:[%s2942_s5 + $0x3d8] sm:$0xff]  ;;  %v2289_v41 = vpack.c.bf16 %v2102_v33, %v2098_v32 }
 0x4dd   :  { %v2283_v43 = vpack.c.bf16 %v2109_v37, %v2105_v34  ;;  %v2291_v44 = vpack.c.bf16 %v2111_v39, %v2107_v38 }
 0x4de   :  { %2058 = vmatmul.mubr.msk.f32.vlgmr.msra.gmra.mrb[6].mxu1 %vm34_vm0, %v1236_v58  ;;  %2059 = vmatmul.mubr.msk.f32.vlgmr.msra.gmra.mrb[4].mxu0 %vm34_vm0, %v1236_v58  ;;  %v1919_v58 = vsub.s32 0, %v1918_v57 }
 0x4df   :  { %2250 = vmatpush1.bf16.msra.mxu1 %v2249_v47  ;;  %2258 = vmatpush1.bf16.msra.mxu0 %v2257_v48  ;;  %v2110_v47 = vld [vmem:[%s2942_s5 + $0x3f0] sm:$0xff]  ;;  %v1578_v48 = vsel %vm561_vm3, %v1574_v35, %v1576_v36 }
 0x4e0   :  { %2252 = vmatprep.subr.bf16.mxu1 %v2251_v51  ;;  %2260 = vmatprep.subr.bf16.mxu0 %v2259_v54  ;;  %v2293_v50 = vpack.c.bf16 %v2110_v47, %v2106_v46  ;;  %v1745_v51 = vrot.slane %v2554_v60, 7  ;;  %v1747_v54 = vrot.slane %v2566_v0, 6  ;;  %v1931_v60 = vsub.s32 3, %v1918_v57 }
 0x4e1   :  { %1492 = vmatprep.mubr.f32.mxu1 %v2371_v28  ;;  %1563 = vmatprep.mubr.f32.mxu0 %v2371_v28  ;;  %v1948_v0 = vunpack.c.l.s4 %v2375_v62 }
 0x4e2   :  { %v1749_v55 = vsel %vm561_vm3, %v1745_v51, %v1747_v54 }
 0x4e3   :  { %2254 = vmatpush1.bf16.msra.mxu1 %v2253_v63  ;;  %2262 = vmatpush1.bf16.msra.mxu0 %v2261_v1 }
 0x4e4   :  { %2264 = vmatprep.subr.bf16.mxu1 %v2263_v3  ;;  %2272 = vmatprep.subr.bf16.mxu0 %v2271_v4  ;;  %v1949_v3 = vunpack.c.0.s8 %v1948_v0 }
 0x4e6   :  { %2076 = vmatmul.mubr.msk.f32.vlgmr.msra.gmra.mrb[6].mxu1 %vm34_vm0, %v1407_v21  ;;  %2077 = vmatmul.mubr.msk.f32.vlgmr.msra.gmra.mrb[4].mxu0 %vm34_vm0, %v1407_v21  ;;  %v1952_v11 = vsub.s32 %v1949_v3, %v1918_v57 }
 0x4e7   :  { %2266 = vmatpush1.bf16.msra.mxu1 %v2265_v12  ;;  %2274 = vmatpush1.bf16.msra.mxu0 %v2273_v13 }
 0x4e8   :  { %2268 = vmatprep.subr.bf16.mxu1 %v2267_v16  ;;  %2276 = vmatprep.subr.bf16.mxu0 %v2275_v17 }
 0x4e9   :  { %1663 = vmatprep.mubr.f32.mxu1 %v2371_v28  ;;  %1734 = vmatprep.mubr.f32.mxu0 %v2371_v28 }
 0x4eb   :  { %2270 = vmatpush1.bf16.msra.mxu1 %v2269_v25  ;;  %2278 = vmatpush1.bf16.msra.mxu0 %v2277_v26 }
 0x4ec   :  { %2280 = vmatprep.subr.bf16.mxu1 %v2279_v30  ;;  %2288 = vmatprep.subr.bf16.mxu0 %v2287_v31 }
 0x4ee   :  { %2094 = vmatmul.mubr.msk.f32.vlgmr.msra.gmra.mrb[6].mxu1 %vm34_vm0, %v1578_v48  ;;  %2095 = vmatmul.mubr.msk.f32.vlgmr.msra.gmra.mrb[4].mxu0 %vm34_vm0, %v1578_v48 }
 0x4ef   :  { %2282 = vmatpush1.bf16.msra.mxu1 %v2281_v40  ;;  %2290 = vmatpush1.bf16.msra.mxu0 %v2289_v41 }
 0x4f0   :  { %2284 = vmatprep.subr.bf16.mxu1 %v2283_v43  ;;  %2292 = vmatprep.subr.bf16.mxu0 %v2291_v44 }
 0x4f1   :  { %1834 = vmatprep.mubr.f32.mxu1 %v2371_v28  ;;  %1905 = vmatprep.mubr.f32.mxu0 %v2371_v28  ;;  %v157_v28 = vld [vmem:[%s2943_s6] sm:$0xf]  ;;  %s2376_s6 = smov [#allocation2]  }
 0x4f2   :  { %v1920_v63 = vrot.slane %v157_v28, %v1919_v58  ;;  %v1928_v1 = vrot.slane %v157_v28, %v1927_v59  ;;  %v1924_v53 = vrot.slane %v157_v28, %v1923_v61  ;;  %v1932_v2 = vrot.slane %v157_v28, %v1931_v60  ;;  %s1970_s19 = sshll.u32 %s2376_s6, 4  ;;  %s1971_s19 = int_to_ptr.vmem [resolvable:$true] %s1970_s19 }
 0x4f3   :  { %2286 = vmatpush1.bf16.msra.mxu1 %v2285_v49  ;;  %2294 = vmatpush1.bf16.msra.mxu0 %v2293_v50  ;;  %s2347_s20 = scalar_lea.vmem %s1971_s19, 128  ;;  %p2352_p1 = scmp.lt.s32.totalorder %s1971_s19, %s1971_s19 }
 0x4f4   :  { %p2348_p0 = scmp.ne.s32.totalorder %s1971_s19, %s2347_s20  ;;  %p2353_p2 = scmp.lt.s32.totalorder %s2347_s20, %s2347_s20 }
 0x4f6   :  { %2112 = vmatmul.mubr.msk.f32.vlgmr.msra.gmra.mrb[6].mxu1 %vm34_vm0, %v1749_v55  ;;  %2113 = vmatmul.mubr.msk.f32.vlgmr.msra.gmra.mrb[4].mxu0 %vm34_vm0, %v1749_v55  ;;  %p2354_p3 = por %p2353_p2, %p2352_p1 }
 0x4f8   :  { %p2355_p4 = pnand %p2354_p3, %p2348_p0 }
 0x5c9   :  { %v1836_v4 = vpop.f32.mrb[6].mxu1  ;;  %v1907_v5 = vpop.f32.mrb[4].mxu0 }
 0x5ca   :  { %v1937_v6 = vadd.f32 %v1920_v63, %v1836_v4  ;;  %v1939_v7 = vadd.f32 %v1928_v1, %v1907_v5  ;;  %v1838_v52 = vpop.f32.mrb[7].mxu1  ;;  %v1909_v8 = vpop.f32.mrb[5].mxu0 }
 0x5cb   :  { %v1938_v9 = vadd.f32 %v1924_v53, %v1838_v52  ;;  %v1940_v10 = vadd.f32 %v1932_v2, %v1909_v8 }
 0x5cd   :  { %v1945_v12 = vcombine.low %v1937_v6, %v1938_v9  ;;  %v1946_v13 = vcombine.low %v1939_v7, %v1940_v10 }
 0x5cf   :  { %v1953_v14 = vrot.slane %v1945_v12, %v1952_v11  ;;  %v1960_v15 = vrot.slane %v1946_v13, %v1952_v11 }
 0x5d1   :  { %v1961_v16 = vcombine.low %v1953_v14, %v1960_v15 }
 0x5d3   :  { %1963 = vst [vmem:[#allocation2] sm:$0xff] %v1961_v16 }
 0x5d4   :  { %2358 = shalt.err (!%p2355_p4)
}
 0x5d5   :  { %s2359_s23 = scalar_lea.hbm %s2944_s7, 128 }
 0x5d6   :  { %p2360_p5 = scmp.ne.s32.totalorder %s2944_s7, %s2359_s23  ;;  %p2363_p6 = scmp.lt.u32.totalorder %s2359_s23, %s2944_s7 }
 0x5d8   :  { %p2365_p7 = pnand %p2363_p6, %p2360_p5 }
 0x5da   :  { %2368 = shalt.err (!%p2365_p7)
}
 0x5db   :  { %1973 = dma.vmem_to_hbm [thread:$0]  %s1971_s19, 128, %s2944_s7, [#allocation3]  }
 0x5dc   :  { %2369 = dma.done.wait [#allocation3], 128  }
 0x5dd   :  { %2370 = vsyncadd [#allocation3], 4294967168 }
 0x5de   :  { %1977 = vsyncpa [#allocation3], 1 }

</bundles_post_ra>
